<compile_context>
chip_gen: v5e
topology: v5e:2x2
jax: 0.10.0
libtpu: 0.0.40
codegen_flags: <defaults>
</compile_context>

<pallas_src>
import functools
import math

import jax
import jax.numpy as jnp
from jax.experimental import pallas as pl
from jax.experimental.pallas import tpu as pltpu


def _round_up(x, m):
    return (x + m - 1) // m * m


def _vmem_capacity_bytes():
    try:
        return int(pltpu.get_tpu_info().vmem_capacity_bytes)
    except Exception:
        return 64 * 1024 * 1024  # conservative (v7x per-TC VMEM)


def _pick_block_m(n_pad, d, bpe, vmem_budget, max_bm=1024):
    """Largest multiple-of-256 divisor of n_pad that fits VMEM and keeps >=2 row blocks."""
    k = n_pad // 256
    best = 256
    for m in range(1, k + 1):
        if k % m:
            continue
        bm = 256 * m
        if bm > max_bm:
            break
        if k // m < 2:          # keep >= 2 row blocks (v7x megacore sharding)
            continue
        need = (2 * (bm + 256) * d * bpe        # double-buffered A + B tiles
                + 4 * bm * 128 * 4              # out + 2 scratch cols (lane-padded)
                + (2 << 20))                    # headroom
        if need > vmem_budget:
            break
        best = bm
    return best


# ----------------------------------------------------------------------------
# Prologue: one-pass L2 normalize + cast to the MXU operand dtype.
# ----------------------------------------------------------------------------
def _l2_normalize_kernel(x_ref, o_ref):
    x = x_ref[...].astype(jnp.float32)
    ss = jnp.sum(x * x, axis=-1, keepdims=True)
    # F.normalize(dim=-1, eps=1e-12): x / max(||x||, 1e-12)
    #   == x * rsqrt(max(||x||^2, 1e-24))   (rsqrt -> EUP, mul -> VPU)
    o_ref[...] = (x * jax.lax.rsqrt(jnp.maximum(ss, 1e-24))).astype(o_ref.dtype)


def _prenormalize(x, out_dtype, block_rows, vmem_limit):
    n_pad, d = x.shape
    return pl.pallas_call(
        _l2_normalize_kernel,
        out_shape=jax.ShapeDtypeStruct((n_pad, d), out_dtype),
        grid_spec=pltpu.PrefetchScalarGridSpec(
            num_scalar_prefetch=0,
            grid=(n_pad // block_rows,),
            in_specs=[pl.BlockSpec((block_rows, d), lambda i: (i, 0))],
            out_specs=pl.BlockSpec((block_rows, d), lambda i: (i, 0))),
        compiler_params=pltpu.CompilerParams(
            dimension_semantics=("parallel",),
            vmem_limit_bytes=int(vmem_limit)),
    )(x)


# ----------------------------------------------------------------------------
# Main tiled kernel: online softmax denominator + positive-logit accumulation.
# ----------------------------------------------------------------------------
def _ntxent_kernel(a_ref, b_ref, out_ref, denom_ref, pos_ref, *,
                   n_views, n_actual, inv_temp):
    """One (row-block i, col-block j) step of the tiled NT-Xent loss.

    a_ref    : [TM, D] pre-normalized anchor rows (matmul dtype)
    b_ref    : [TN, D] pre-normalized contrast rows (matmul dtype)
    out_ref  : [TM, 1] per-anchor mean log-prob over positives (written last j)
    denom_ref: [TM, 1] scratch: running sum of exp(logits) over non-self cols
    pos_ref  : [TM, 1] scratch: running sum of positive logits
    """
    i = pl.program_id(0)
    j = pl.program_id(1)
    tm = a_ref.shape[0]
    tn = b_ref.shape[0]

    @pl.when(j == 0)
    def _():
        denom_ref[...] = jnp.zeros_like(denom_ref)
        pos_ref[...] = jnp.zeros_like(pos_ref)

    # Skip fully-padded column blocks (no MXU / exp work on garbage columns).
    @pl.when(j * tn < n_actual)
    def _():
        # MXU matmul in NT form (contract D on both operands), f32 accumulation.
        s = jax.lax.dot_general(
            a_ref[...], b_ref[...], (((1,), (1,)), ((), ())),
            preferred_element_type=jnp.float32)
        # Constant shift: the diagonal (cos = 1) is the row max after L2 norm,
        # so logits = (sim - 1) / T replaces the row-max reduce.  log_prob is
        # shift-invariant, so bf16 rounding pushing an off-diagonal sim
        # marginally above 1 is harmless.
        s = (s - 1.0) * inv_temp

        # Index math on [TM,1] / [1,TN] iotas only (no N x N integer tensors).
        row_ids = i * tm + jax.lax.broadcasted_iota(jnp.int32, (tm, 1), 0)
        col_ids = j * tn + jax.lax.broadcasted_iota(jnp.int32, (1, tn), 1)
        valid_col = col_ids < n_actual            # mask out padded columns
        not_diag = row_ids != col_ids             # exclude self-contrast
        keep = jnp.logical_and(valid_col, not_diag)
        # Batch-major layout: row = b * n_views + v; same sample <=> same group.
        if n_views & (n_views - 1) == 0:          # power of two (common case)
            shift = n_views.bit_length() - 1
            row_grp = jnp.right_shift(row_ids, shift)
            col_grp = jnp.right_shift(col_ids, shift)
        else:
            row_grp = row_ids // n_views
            col_grp = col_ids // n_views
        positive = jnp.logical_and(keep, row_grp == col_grp)

        # Online accumulation of the softmax denominator and positive sum.
        p = jnp.where(keep, jnp.exp(s), 0.0)
        denom_ref[...] += jnp.sum(p, axis=1, keepdims=True)
        pos_ref[...] += jnp.sum(jnp.where(positive, s, 0.0), axis=1, keepdims=True)

    # Finalize this row block on the last column step only.
    @pl.when(j == pl.num_programs(1) - 1)
    def _():
        row_ids = i * tm + jax.lax.broadcasted_iota(jnp.int32, (tm, 1), 0)
        pos_count = float(n_views - 1)            # positives per anchor (constant)
        mean_log_prob_pos = (
            pos_ref[...] - pos_count * jnp.log(denom_ref[...])
        ) / (pos_count + 1e-12)
        # Zero padded rows so the raw kernel output is safe to consume directly.
        out_ref[...] = jnp.where(row_ids < n_actual, mean_log_prob_pos, 0.0)


def ntxent_loss(features, temperature=1.0, *, matmul_dtype=jnp.bfloat16,
                block_m=None, block_n=None):
    """NT-Xent loss (unsupervised SimCLR case: labels=None, mask=None).

    features: [bsz, n_views, ...] — trailing dims are flattened to D; any float
    dtype (cast + normalization happen in a one-pass prologue kernel).
    Returns a scalar float32 loss.
    """
    if features.ndim < 3:
        raise ValueError("`features` needs to be [bsz, n_views, ...], "
                         "at least 3 dimensions are required")
    bsz, n_views = features.shape[0], features.shape[1]
    if n_views < 2:
        raise ValueError("NT-Xent needs n_views >= 2 (no positives otherwise)")
    n = bsz * n_views
    # Batch-major flatten (row = b * n_views + v). The loss is permutation
    # invariant over anchors, so no view-major transpose / extra HBM copy.
    contrast = features.reshape(n, -1)
    d = contrast.shape[-1]
    bpe = jnp.dtype(matmul_dtype).itemsize

    vmem_cap = _vmem_capacity_bytes()
    # ~48 MiB on v7x (64 MiB physical), ~96 MiB on v5e/v6e (128 MiB physical).
    vmem_budget = max(32 * 1024 * 1024, min((vmem_cap * 3) // 4, 112 * 1024 * 1024))

    if block_m is None and block_n is None:
        if n <= 256:
            n_pad = _round_up(n, 8)
            block_m = block_n = n_pad
        else:
            n_pad = _round_up(n, 256)             # padding < 256 rows
            block_n = 256
            block_m = _pick_block_m(n_pad, d, bpe, vmem_budget)
    else:
        block_n = block_n if block_n is not None else min(256, _round_up(n, 8))
        block_m = block_m if block_m is not None else block_n
        assert block_m % 8 == 0 and block_n % 8 == 0
        n_pad = _round_up(n, block_m * block_n // math.gcd(block_m, block_n))

    if n_pad != n:
        contrast = jnp.pad(contrast, ((0, n_pad - n), (0, 0)))

    # One-pass L2 normalize + cast to the MXU operand dtype.  With bf16 this
    # halves the HBM bytes streamed by the tiled kernel and removes all
    # per-step renormalization work.
    contrast_n = _prenormalize(contrast, matmul_dtype, block_n, vmem_budget)

    grid = (n_pad // block_m, n_pad // block_n)
    kernel = functools.partial(
        _ntxent_kernel, n_views=n_views, n_actual=n,
        inv_temp=float(1.0 / temperature))

    mean_log_prob_pos = pl.pallas_call(
        kernel,
        out_shape=jax.ShapeDtypeStruct((n_pad, 1), jnp.float32),
        grid_spec=pltpu.PrefetchScalarGridSpec(
            num_scalar_prefetch=0,
            grid=grid,
            in_specs=[
                pl.BlockSpec((block_m, d), lambda i, j: (i, 0)),   # anchor rows
                pl.BlockSpec((block_n, d), lambda i, j: (j, 0)),   # contrast rows
            ],
            out_specs=pl.BlockSpec((block_m, 1), lambda i, j: (i, 0)),
            scratch_shapes=[
                pltpu.VMEM((block_m, 1), jnp.float32),    # softmax denominator
                pltpu.VMEM((block_m, 1), jnp.float32),    # positive-logit sum
            ]),
        compiler_params=pltpu.CompilerParams(
            dimension_semantics=("parallel", "arbitrary"),
            vmem_limit_bytes=int(vmem_budget)),
    )(contrast_n, contrast_n)

    # Final mean over the N real anchors (padding rows are zero and sliced away).
    return -jnp.mean(mean_log_prob_pos[:n, 0])


def _ntxent_reference(features, temperature=1.0):
    """Pure-JAX reference mirroring the PyTorch module (labels=None, mask=None)."""
    bsz, n_views = features.shape[0], features.shape[1]
    feats = features.reshape(bsz, n_views, -1).astype(jnp.float32)
    norm = jnp.sqrt(jnp.sum(feats * feats, axis=-1, keepdims=True))
    feats = feats / jnp.maximum(norm, 1e-12)
    contrast = jnp.transpose(feats, (1, 0, 2)).reshape(bsz * n_views, -1)
    n = contrast.shape[0]
    sim = jnp.matmul(contrast, contrast.T,
                     precision=jax.lax.Precision.HIGHEST) / temperature
    logits = sim - jnp.max(sim, axis=1, keepdims=True)
    eye_n = jnp.eye(n, dtype=jnp.float32)
    logits_mask = 1.0 - eye_n
    pos_mask = jnp.tile(jnp.eye(bsz, dtype=jnp.float32), (n_views, n_views)) * logits_mask
    exp_logits = jnp.exp(logits) * logits_mask
    log_prob = logits - jnp.log(jnp.sum(exp_logits, axis=1, keepdims=True))
    mean_log_prob_pos = jnp.sum(pos_mask * log_prob, axis=1) / (
        jnp.sum(pos_mask, axis=1) + 1e-12)
    return -jnp.mean(mean_log_prob_pos)


if __name__ == "__main__":
    key = jax.random.PRNGKey(0)

    # [bsz, n_views, c, w] — trailing dims flattened to D = 32 in the wrapper.
    features = jax.random.normal(key, (8, 2, 4, 8), dtype=jnp.float32)
    ref = _ntxent_reference(features, temperature=0.5)

    # f32 MXU-operand path: checks the kernel logic.
    loss_f32 = jax.block_until_ready(
        ntxent_loss(features, temperature=0.5, matmul_dtype=jnp.float32))
    assert jnp.allclose(loss_f32, ref, atol=5e-3, rtol=5e-3), (loss_f32, ref)

    # Default bf16 MXU-operand path (f32 accumulation): looser tolerance.
    loss_bf16 = jax.block_until_ready(ntxent_loss(features, temperature=0.5))
    assert jnp.allclose(loss_bf16, ref, atol=3e-2, rtol=3e-2), (loss_bf16, ref)

    # Multi-block grid, online accumulation and partial-block padding masks
    # with tiny tiles (N = 26 -> padded to 32, 4x4 grid).
    features2 = jax.random.normal(jax.random.PRNGKey(0), (13, 2, 4, 8),
                                  dtype=jnp.float32)
    ref2 = _ntxent_reference(features2, temperature=0.7)
    loss_tiled = jax.block_until_ready(
        ntxent_loss(features2, temperature=0.7, matmul_dtype=jnp.float32,
                    block_m=8, block_n=8))
    assert jnp.allclose(loss_tiled, ref2, atol=5e-3, rtol=5e-3), (loss_tiled, ref2)

    # Fully-padded column-block skip + padded-row zeroing
    # (N = 10 -> padded to 32, grid (1, 4): column blocks 2 and 3 are skipped).
    features3 = jax.random.normal(jax.random.PRNGKey(1), (5, 2, 3, 8),
                                  dtype=jnp.float32)
    ref3 = _ntxent_reference(features3, temperature=0.5)
    loss_skip = jax.block_until_ready(
        ntxent_loss(features3, temperature=0.5, matmul_dtype=jnp.float32,
                    block_m=32, block_n=8))
    assert jnp.allclose(loss_skip, ref3, atol=5e-3, rtol=5e-3), (loss_skip, ref3)

    # Auto block selection on a larger problem (N = 320 -> padded to 512,
    # 2x2 grid of 256x256 tiles, exercises the default multi-block path).
    features4 = jax.random.normal(jax.random.PRNGKey(2), (160, 2, 8, 8),
                                  dtype=jnp.float32)
    ref4 = _ntxent_reference(features4, temperature=0.5)
    loss_auto = jax.block_until_ready(
        ntxent_loss(features4, temperature=0.5, matmul_dtype=jnp.float32))
    assert jnp.allclose(loss_auto, ref4, atol=5e-3, rtol=5e-3), (loss_auto, ref4)

    print("KERNEL_OK")
</pallas_src>

<mosaic_0001>
module attributes {stable_mosaic.version = 11 : i64} {
  func.func @_l2_normalize_kernel(%arg0: i32, %arg1: memref<16x32xf32, #tpu.memory_space<vmem>>, %arg2: memref<16x32xf32, #tpu.memory_space<vmem>>) attributes {dimension_semantics = [#tpu.dimension_semantics<parallel>], iteration_bounds = array<i64: 1>, scalar_prefetch = 0 : i64, scratch_operands = 0 : i64, tpu.core_type = #tpu.core_type<tc>, window_params = [{transform_indices = @transform_0, window_bounds = array<i64: 16, 32>}, {transform_indices = @transform_1, window_bounds = array<i64: 16, 32>}]} {
    %c0 = arith.constant 0 : index
    %c0_0 = arith.constant 0 : index
    %0 = vector.load %arg1[%c0, %c0_0] : memref<16x32xf32, #tpu.memory_space<vmem>>, vector<16x32xf32>
    %1 = arith.mulf %0, %0 : vector<16x32xf32>
    %cst = arith.constant dense<0.000000e+00> : vector<16xf32>
    %2 = vector.multi_reduction <add>, %1, %cst [1] : vector<16x32xf32> to vector<16xf32>
    %3 = vector.shape_cast %2 : vector<16xf32> to vector<16x1xf32>
    %cst_1 = arith.constant 1.000000e-24 : f32
    %4 = vector.broadcast %cst_1 : f32 to vector<16x1xf32>
    %5 = arith.maximumf %3, %4 : vector<16x1xf32>
    %6 = math.rsqrt %5 : vector<16x1xf32>
    %7 = vector.broadcast %6 : vector<16x1xf32> to vector<16x32xf32>
    %8 = arith.mulf %0, %7 : vector<16x32xf32>
    %c0_2 = arith.constant 0 : index
    %c0_3 = arith.constant 0 : index
    %9 = vector.load %arg2[%c0_2, %c0_3] : memref<16x32xf32, #tpu.memory_space<vmem>>, vector<16x32xf32>
    tpu.vector_store %arg2[%c0_2, %c0_3], %8 {strides = array<i32>} : memref<16x32xf32, #tpu.memory_space<vmem>>, vector<16x32xf32>,
    return
  }
  func.func @transform_0(%arg0: i32) -> (i32, i32) {
    %c0_i32 = arith.constant 0 : i32
    %c0_i32_0 = arith.constant 0 : i32
    return %arg0, %c0_i32 : i32, i32
  }
  func.func @transform_1(%arg0: i32) -> (i32, i32) {
    %c0_i32 = arith.constant 0 : i32
    %c0_i32_0 = arith.constant 0 : i32
    return %arg0, %c0_i32 : i32, i32
  }
}

</mosaic_0001>

<bundles_post_ra>
// kernel: tpu_custom_call.1
= control target key start
LH: loop header
LB: loop body
LE: loop exit
PB: predicated region body
PF: predicated region fallthrough
CT: control target
= control target key end

     0   :  { %6 = vsyncpa [#allocation3], 0  ;;  %s171_s0 = inlined_call_operand.hbm [shape: f32[16,32], index: 0, kind: input, shape index: {}]   ;;  %s172_s1 = inlined_call_operand.hbm [shape: f32[16,32], index: 1, kind: output, shape index: {}]  }
   0x1   :  { %7 = vsyncpa [#allocation4], 0  ;;  %s12_s8 = sshll.u32 %s171_s0, 4  ;;  %s141_s9 = smov [#allocation2]   ;;  %s13_s8 = int_to_ptr.hbm [resolvable:$true] %s12_s8 }
   0x2   :  { %s14_s10 = sshll.u32 %s141_s9, 4  ;;  %s142_s11 = smov 128   ;;  %s15_s10 = int_to_ptr.vmem [resolvable:$true] %s14_s10 }
   0x3   :  { %s143_s12 = smov 8  }
   0x4   :  { %20 = dma.hbm_to_vmem [thread:$0]  %s13_s8, 256, %s15_s10, [#allocation3], %s142_s11, %s142_s11, %s143_s12  }
   0x5   :  { %137 = dma.done.wait [#allocation3], 256  }
   0x6   :  { %138 = vsyncadd [#allocation3], 4294967040  ;;  %v25_v0 = vld [vmem:[#allocation2] sm:$0xff]  ;;  %vm29_vm0 = vcmask 261120   ;;  %v26_v2 = vld [vmem:[#allocation2 + $0x8] sm:$0xff]  ;;  %s144_s0 = smov [#allocation5]  }
   0x7   :  { %v27_v1 = vmul.f32 %v25_v0, %v25_v0  ;;  %v28_v4 = vmul.f32 %v26_v2, %v26_v2  ;;  %s66_s13 = sshll.u32 %s144_s0, 4  ;;  %s68_s16 = sshll.u32 %s172_s1, 4  ;;  %s67_s13 = int_to_ptr.vmem [resolvable:$true] %s66_s13  ;;  %s69_s16 = int_to_ptr.hbm [resolvable:$true] %s68_s16 }
   0x9   :  { %v30_v3 = vsel %vm29_vm0, %v27_v1, 0.0  ;;  %v33_v5 = vsel %vm29_vm0, %v28_v4, 0.0 }
   0xa   :  { %31 = vadd.xlane.f32.xlu0 %v30_v3 }
  0x12   :  { %34 = vadd.xlane.f32.xlu0 %v33_v5 }
  0x7d   :  { %v32_v6 = vpop.xlane.xlu0 %31 }
  0x7e   :  { %v36_v7 = vmax.f32 %v32_v6, 1e-24 }
  0x80   :  { %85 = vrsqrt.f32 %v36_v7  ;;  %vm44_vm2 = vweird.f32 %v36_v7 }
  0x85   :  { %v35_v8 = vpop.xlane.xlu0 %34 }
  0x86   :  { %v86_v9 = vpop.eup %85  ;;  %v37_v10 = vmax.f32 %v35_v8, 1e-24 }
  0x87   :  { %v39_v11 = vmul.f32 %v86_v9, %v36_v7  ;;  %vm45_vm1 = vweird.f32 %v86_v9 }
  0x88   :  { %87 = vrsqrt.f32 %v37_v10  ;;  %vm46_vm3 = vmor %vm44_vm2, %vm45_vm1  ;;  %vm54_vm5 = vweird.f32 %v37_v10 }
  0x89   :  { %v40_v12 = vmul.f32 %v86_v9, %v39_v11 }
  0x8b   :  { %v41_v13 = vmul.f32 0.5, %v40_v12 }
  0x8d   :  { %v42_v14 = vsub.f32 1.5, %v41_v13 }
  0x8e   :  { %v88_v15 = vpop.eup %87 }
  0x8f   :  { %v43_v16 = vmul.f32 %v86_v9, %v42_v14  ;;  %v49_v17 = vmul.f32 %v88_v15, %v37_v10  ;;  %vm55_vm4 = vweird.f32 %v88_v15 }
  0x90   :  { %vm56_vm6 = vmor %vm54_vm5, %vm55_vm4 }
  0x91   :  { %v47_v18 = vsel %vm46_vm3, %v86_v9, %v43_v16  ;;  %v50_v19 = vmul.f32 %v88_v15, %v49_v17 }
  0x92   :  { %v58_v20 = vmul.f32 %v47_v18, %v25_v0 }
  0x93   :  { %v51_v21 = vmul.f32 0.5, %v50_v19 }
  0x94   :  { %60 = vst.msk [vmem:[#allocation5] sm:$0xff] %vm29_vm0, %v58_v20 }
  0x95   :  { %v52_v22 = vsub.f32 1.5, %v51_v21 }
  0x97   :  { %v53_v23 = vmul.f32 %v88_v15, %v52_v22 }
  0x99   :  { %v57_v24 = vsel %vm56_vm6, %v88_v15, %v53_v23 }
  0x9a   :  { %v59_v25 = vmul.f32 %v57_v24, %v26_v2 }
  0x9c   :  { %61 = vst.msk [vmem:[#allocation5 + $0x8] sm:$0xff] %vm29_vm0, %v59_v25 }
  0x9d   :  { %74 = dma.vmem_to_hbm [thread:$0]  %s67_s13, 256, %s69_s16, [#allocation4], %s142_s11, %s142_s11, %s143_s12  }
  0x9e   :  { %139 = dma.done.wait [#allocation4], 256  }
  0x9f   :  { %140 = vsyncadd [#allocation4], 4294967040 }
  0xa0   :  { %79 = vsyncpa [#allocation3], 1 }
  0xa1   :  { %80 = vsyncpa [#allocation4], 1 }

</bundles_post_ra>
